<compile_context>
chip_gen: v7x
topology: tpu7x:2x2x1
jax: 0.10.0
libtpu: 0.0.40
codegen_flags: <defaults>
</compile_context>

<pallas_src>
import functools

import jax
import jax.numpy as jnp
from jax.experimental import pallas as pl
from jax.experimental.pallas import tpu as pltpu


def _round_up(n, m):
    return ((n + m - 1) // m) * m


def _disc_kernel(x_ref, w0_ref, b0_ref, w1_ref, b1_ref, wf_ref, bf_ref, out_ref):
    # x tile arrives f32; cast to bf16 in-register (saves a wrapper-side HBM pass).
    x = x_ref[...].astype(jnp.bfloat16)

    # Hidden layer 0: Linear (bf16 MXU, f32 accum) + ReLU   (Dropout == identity in eval)
    h0 = jnp.dot(x, w0_ref[...], preferred_element_type=jnp.float32) + b0_ref[...]
    h0 = jnp.maximum(h0, 0.0).astype(jnp.bfloat16)

    # Hidden layer 1: Linear (bf16 MXU, f32 accum) + ReLU
    h1 = jnp.dot(h0, w1_ref[...], preferred_element_type=jnp.float32) + b1_ref[...]
    h1 = jnp.maximum(h1, 0.0).astype(jnp.bfloat16)

    # Final classifier: bf16 x bf16 -> f32 accum over the lane-padded width.
    # Padded columns: wf == 0 and bf == -inf, so padded logits are exactly -inf.
    logits = jnp.dot(h1, wf_ref[...], preferred_element_type=jnp.float32) + bf_ref[...]

    # Numerically stable log_softmax over the class axis; exp(-inf) == 0 removes padded
    # lanes from the denominator, so real-column results are unaffected.
    m = jnp.max(logits, axis=1, keepdims=True)
    shifted = logits - m
    lse = jnp.log(jnp.sum(jnp.exp(shifted), axis=1, keepdims=True))
    out_ref[...] = (shifted - lse).astype(out_ref.dtype)


def prepare_params(params):
    """One-time parameter preprocessing (do NOT call per forward).

    Returns (prepared_pytree, num_classes): bf16 weights, f32 biases, classifier
    lane-padded to a multiple of 128 (wf pad = 0, bf pad = -inf).
    """
    C = params["wf"].shape[1]
    CP = _round_up(C, 128)

    wf = params["wf"].astype(jnp.bfloat16)
    bf = params["bf"].astype(jnp.float32)
    if CP != C:
        wf = jnp.pad(wf, ((0, 0), (0, CP - C)))
        bf = jnp.pad(bf, ((0, 0), (0, CP - C)), constant_values=-jnp.inf)

    prepared = {
        "w0": params["w0"].astype(jnp.bfloat16),
        "b0": params["b0"].astype(jnp.float32),
        "w1": params["w1"].astype(jnp.bfloat16),
        "b1": params["b1"].astype(jnp.float32),
        "wf": wf,
        "bf": bf,
    }
    return prepared, C


@functools.partial(jax.jit, static_argnames=("batch_tile",))
def domain_discriminator_forward_padded(x, prepared, batch_tile=512):
    """x: (B, H) float32. prepared: output of prepare_params(). Returns (B_pad, CP) f32."""
    B, H = x.shape
    CP = prepared["wf"].shape[1]

    # Batch tiling: large tiles fill the MXU M dimension and amortize the ~0.35us/step
    # pipeline overhead; keep >= 2 grid steps once there are >= ~128 rows so both v7x
    # TensorCores receive work via dimension_semantics=("parallel",).
    tile = min(batch_tile, _round_up(B, 16))
    half = _round_up((B + 1) // 2, 16)
    if half >= 64:
        tile = min(tile, half)
    B_pad = _round_up(B, tile)

    x_in = x.astype(jnp.float32)
    if B_pad != B:
        # Row padding only materialized when strictly needed for the last tile.
        x_in = jnp.pad(x_in, ((0, B_pad - B), (0, 0)))

    grid = (B_pad // tile,)

    # Advisory cost estimate for XLA scheduling around the custom call.
    flops = 2 * B_pad * H * H * 2 + 2 * B_pad * H * CP
    transcendentals = B_pad * (CP + 1)  # exp over padded lanes + one log per row
    bytes_accessed = (
        x_in.size * 4
        + (prepared["w0"].size + prepared["w1"].size + prepared["wf"].size) * 2
        + (prepared["b0"].size + prepared["b1"].size + prepared["bf"].size) * 4
        + B_pad * CP * 4
    )
    cost = pl.CostEstimate(
        flops=flops, transcendentals=transcendentals, bytes_accessed=bytes_accessed
    )

    # Weights/biases use a constant block index -> fetched once and resident in VMEM.
    # TODO(synk): for large H on v7x (64 MiB VMEM) single-buffer these resident specs
    # (pipeline_mode=pl.Buffered(1)) or tile the contraction dim; negligible at H<=1024.
    resident = lambda shape: pl.BlockSpec(shape, lambda i: (0, 0))

    return pl.pallas_call(
        _disc_kernel,
        out_shape=jax.ShapeDtypeStruct((B_pad, CP), jnp.float32),
        grid=grid,
        in_specs=[
            pl.BlockSpec((tile, H), lambda i: (i, 0)),  # x tile (f32, cast in-kernel)
            resident((H, H)),   # w0 (bf16)
            resident((1, H)),   # b0 (f32)
            resident((H, H)),   # w1 (bf16)
            resident((1, H)),   # b1 (f32)
            resident((H, CP)),  # wf (bf16, lane-padded with zeros)
            resident((1, CP)),  # bf (f32, lane-padded with -inf)
        ],
        out_specs=pl.BlockSpec((tile, CP), lambda i: (i, 0)),
        compiler_params=pltpu.CompilerParams(
            dimension_semantics=("parallel",),
        ),
        cost_estimate=cost,
    )(x_in, prepared["w0"], prepared["b0"], prepared["w1"], prepared["b1"],
      prepared["wf"], prepared["bf"])


def domain_discriminator_forward(x, prepared, num_classes, batch_tile=512):
    """PyTorch-shaped (B, num_classes) log-probabilities.

    Consumers that can slice lazily (or tolerate the lane-padded layout) should call
    domain_discriminator_forward_padded directly to avoid this extra output pass.
    """
    out = domain_discriminator_forward_padded(x, prepared, batch_tile=batch_tile)
    return out[: x.shape[0], :num_classes]


def init_params(key, hidden_size, num_classes):
    """Deterministic synthetic parameters (PyTorch-like uniform init scale), f32."""
    ks = jax.random.split(key, 6)
    s_h = 1.0 / jnp.sqrt(hidden_size)
    return {
        "w0": jax.random.uniform(ks[0], (hidden_size, hidden_size), jnp.float32, -s_h, s_h),
        "b0": jax.random.uniform(ks[1], (1, hidden_size), jnp.float32, -s_h, s_h),
        "w1": jax.random.uniform(ks[2], (hidden_size, hidden_size), jnp.float32, -s_h, s_h),
        "b1": jax.random.uniform(ks[3], (1, hidden_size), jnp.float32, -s_h, s_h),
        "wf": jax.random.uniform(ks[4], (hidden_size, num_classes), jnp.float32, -s_h, s_h),
        "bf": jax.random.uniform(ks[5], (1, num_classes), jnp.float32, -s_h, s_h),
    }


def reference_forward_bf16(x, params):
    """Pure-JAX reference mirroring kernel numerics (bf16 matmuls, f32 accumulation)."""
    xb = x.astype(jnp.bfloat16)
    w0 = params["w0"].astype(jnp.bfloat16)
    w1 = params["w1"].astype(jnp.bfloat16)
    wf = params["wf"].astype(jnp.bfloat16)
    h = jnp.maximum(jnp.dot(xb, w0, preferred_element_type=jnp.float32) + params["b0"], 0.0)
    h = jnp.maximum(
        jnp.dot(h.astype(jnp.bfloat16), w1, preferred_element_type=jnp.float32) + params["b1"],
        0.0,
    )
    logits = (
        jnp.dot(h.astype(jnp.bfloat16), wf, preferred_element_type=jnp.float32) + params["bf"]
    )
    return jax.nn.log_softmax(logits, axis=1)


def reference_forward_f32(x, params):
    """Full-f32 reference of the PyTorch forward (eval mode), loose sanity check."""
    h = jnp.maximum(x @ params["w0"] + params["b0"], 0.0)
    h = jnp.maximum(h @ params["w1"] + params["b1"], 0.0)
    logits = h @ params["wf"] + params["bf"]
    return jax.nn.log_softmax(logits, axis=1)


if __name__ == "__main__":
    hidden_size, num_classes = 256, 6
    key = jax.random.PRNGKey(0)
    k_x1, k_x2, k_p = jax.random.split(key, 3)
    params = init_params(k_p, hidden_size, num_classes)

    # One-time parameter preprocessing, hoisted off the per-call path.
    prepared, C = prepare_params(params)

    # Case 1: small batch (single grid step).
    x1 = jax.random.normal(k_x1, (16, hidden_size), dtype=jnp.float32)
    out1 = jax.block_until_ready(domain_discriminator_forward(x1, prepared, C))
    assert out1.shape == (16, num_classes)
    assert jnp.allclose(out1, reference_forward_bf16(x1, params), atol=2e-5, rtol=2e-5)
    assert jnp.allclose(out1, reference_forward_f32(x1, params), atol=5e-2, rtol=5e-2)

    # Case 2: non-multiple batch (exercises row padding + >= 2 grid steps / megacore split).
    x2 = jax.random.normal(k_x2, (300, hidden_size), dtype=jnp.float32)
    out2 = jax.block_until_ready(domain_discriminator_forward(x2, prepared, C))
    assert out2.shape == (300, num_classes)
    assert jnp.allclose(out2, reference_forward_bf16(x2, params), atol=2e-5, rtol=2e-5)
    assert jnp.allclose(out2, reference_forward_f32(x2, params), atol=5e-2, rtol=5e-2)

    print("KERNEL_OK")
</pallas_src>

<mosaic_0001>
module attributes {stable_mosaic.version = 11 : i64} {
  func.func @_disc_kernel(%arg0: i32, %arg1: memref<16x256xf32, #tpu.memory_space<vmem>>, %arg2: memref<256x256xbf16, #tpu.memory_space<vmem>>, %arg3: memref<1x256xf32, #tpu.memory_space<vmem>>, %arg4: memref<256x256xbf16, #tpu.memory_space<vmem>>, %arg5: memref<1x256xf32, #tpu.memory_space<vmem>>, %arg6: memref<256x128xbf16, #tpu.memory_space<vmem>>, %arg7: memref<1x128xf32, #tpu.memory_space<vmem>>, %arg8: memref<16x128xf32, #tpu.memory_space<vmem>>) attributes {dimension_semantics = [#tpu.dimension_semantics<parallel>], iteration_bounds = array<i64: 1>, scalar_prefetch = 0 : i64, scratch_operands = 0 : i64, tpu.core_type = #tpu.core_type<tc>, window_params = [{transform_indices = @transform_0, window_bounds = array<i64: 16, 256>}, {pipeline_mode = #tpu.pipeline_mode<synchronous>, transform_indices = @transform_1, window_bounds = array<i64: 256, 256>}, {pipeline_mode = #tpu.pipeline_mode<synchronous>, transform_indices = @transform_2, window_bounds = array<i64: 1, 256>}, {pipeline_mode = #tpu.pipeline_mode<synchronous>, transform_indices = @transform_3, window_bounds = array<i64: 256, 256>}, {pipeline_mode = #tpu.pipeline_mode<synchronous>, transform_indices = @transform_4, window_bounds = array<i64: 1, 256>}, {pipeline_mode = #tpu.pipeline_mode<synchronous>, transform_indices = @transform_5, window_bounds = array<i64: 256, 128>}, {pipeline_mode = #tpu.pipeline_mode<synchronous>, transform_indices = @transform_6, window_bounds = array<i64: 1, 128>}, {transform_indices = @transform_7, window_bounds = array<i64: 16, 128>}]} {
    %c0 = arith.constant 0 : index
    %c0_0 = arith.constant 0 : index
    %0 = vector.load %arg1[%c0, %c0_0] : memref<16x256xf32, #tpu.memory_space<vmem>>, vector<16x256xf32>
    %1 = arith.truncf %0 : vector<16x256xf32> to vector<16x256xbf16>
    %c0_1 = arith.constant 0 : index
    %c0_2 = arith.constant 0 : index
    %2 = vector.load %arg2[%c0_1, %c0_2] : memref<256x256xbf16, #tpu.memory_space<vmem>>, vector<256x256xbf16>
    %cst = arith.constant dense<0.000000e+00> : vector<16x256xf32>
    %3 = tpu.matmul %1, %2, %cst {dimension_numbers = #tpu.dot_dimension_numbers<[1], [0], [0], [1], [0, 0, 1, 1], [], []>} : vector<16x256xbf16>, vector<256x256xbf16>, vector<16x256xf32> -> vector<16x256xf32>
    %c0_3 = arith.constant 0 : index
    %c0_4 = arith.constant 0 : index
    %4 = vector.load %arg3[%c0_3, %c0_4] : memref<1x256xf32, #tpu.memory_space<vmem>>, vector<1x256xf32>
    %5 = vector.broadcast %4 : vector<1x256xf32> to vector<16x256xf32>
    %6 = arith.addf %3, %5 : vector<16x256xf32>
    %cst_5 = arith.constant 0.000000e+00 : f32
    %7 = vector.broadcast %cst_5 : f32 to vector<16x256xf32>
    %8 = arith.maximumf %6, %7 : vector<16x256xf32>
    %9 = arith.truncf %8 : vector<16x256xf32> to vector<16x256xbf16>
    %c0_6 = arith.constant 0 : index
    %c0_7 = arith.constant 0 : index
    %10 = vector.load %arg4[%c0_6, %c0_7] : memref<256x256xbf16, #tpu.memory_space<vmem>>, vector<256x256xbf16>
    %cst_8 = arith.constant dense<0.000000e+00> : vector<16x256xf32>
    %11 = tpu.matmul %9, %10, %cst_8 {dimension_numbers = #tpu.dot_dimension_numbers<[1], [0], [0], [1], [0, 0, 1, 1], [], []>} : vector<16x256xbf16>, vector<256x256xbf16>, vector<16x256xf32> -> vector<16x256xf32>
    %c0_9 = arith.constant 0 : index
    %c0_10 = arith.constant 0 : index
    %12 = vector.load %arg5[%c0_9, %c0_10] : memref<1x256xf32, #tpu.memory_space<vmem>>, vector<1x256xf32>
    %13 = vector.broadcast %12 : vector<1x256xf32> to vector<16x256xf32>
    %14 = arith.addf %11, %13 : vector<16x256xf32>
    %cst_11 = arith.constant 0.000000e+00 : f32
    %15 = vector.broadcast %cst_11 : f32 to vector<16x256xf32>
    %16 = arith.maximumf %14, %15 : vector<16x256xf32>
    %17 = arith.truncf %16 : vector<16x256xf32> to vector<16x256xbf16>
    %c0_12 = arith.constant 0 : index
    %c0_13 = arith.constant 0 : index
    %18 = vector.load %arg6[%c0_12, %c0_13] : memref<256x128xbf16, #tpu.memory_space<vmem>>, vector<256x128xbf16>
    %cst_14 = arith.constant dense<0.000000e+00> : vector<16x128xf32>
    %19 = tpu.matmul %17, %18, %cst_14 {dimension_numbers = #tpu.dot_dimension_numbers<[1], [0], [0], [1], [0, 0, 1, 1], [], []>} : vector<16x256xbf16>, vector<256x128xbf16>, vector<16x128xf32> -> vector<16x128xf32>
    %c0_15 = arith.constant 0 : index
    %c0_16 = arith.constant 0 : index
    %20 = vector.load %arg7[%c0_15, %c0_16] : memref<1x128xf32, #tpu.memory_space<vmem>>, vector<1x128xf32>
    %21 = vector.broadcast %20 : vector<1x128xf32> to vector<16x128xf32>
    %22 = arith.addf %19, %21 : vector<16x128xf32>
    %cst_17 = arith.constant dense<0xFF800000> : vector<16xf32>
    %23 = vector.multi_reduction <maximumf>, %22, %cst_17 [1] : vector<16x128xf32> to vector<16xf32>
    %24 = vector.shape_cast %23 : vector<16xf32> to vector<16x1xf32>
    %25 = vector.broadcast %24 : vector<16x1xf32> to vector<16x128xf32>
    %26 = arith.subf %22, %25 : vector<16x128xf32>
    %27 = math.exp %26 : vector<16x128xf32>
    %cst_18 = arith.constant dense<0.000000e+00> : vector<16xf32>
    %28 = vector.multi_reduction <add>, %27, %cst_18 [1] : vector<16x128xf32> to vector<16xf32>
    %29 = vector.shape_cast %28 : vector<16xf32> to vector<16x1xf32>
    %30 = math.log %29 : vector<16x1xf32>
    %31 = vector.broadcast %30 : vector<16x1xf32> to vector<16x128xf32>
    %32 = arith.subf %26, %31 : vector<16x128xf32>
    %c0_19 = arith.constant 0 : index
    %c0_20 = arith.constant 0 : index
    %33 = vector.load %arg8[%c0_19, %c0_20] : memref<16x128xf32, #tpu.memory_space<vmem>>, vector<16x128xf32>
    tpu.vector_store %arg8[%c0_19, %c0_20], %32 {strides = array<i32>} : memref<16x128xf32, #tpu.memory_space<vmem>>, vector<16x128xf32>,
    return
  }
  func.func @transform_0(%arg0: i32) -> (i32, i32) {
    %c0_i32 = arith.constant 0 : i32
    %c0_i32_0 = arith.constant 0 : i32
    return %arg0, %c0_i32 : i32, i32
  }
  func.func @transform_1(%arg0: i32) -> (i32, i32) {
    %c0_i32 = arith.constant 0 : i32
    %c0_i32_0 = arith.constant 0 : i32
    %c0_i32_1 = arith.constant 0 : i32
    return %c0_i32, %c0_i32_0 : i32, i32
  }
  func.func @transform_2(%arg0: i32) -> (i32, i32) {
    %c0_i32 = arith.constant 0 : i32
    %c0_i32_0 = arith.constant 0 : i32
    %c0_i32_1 = arith.constant 0 : i32
    return %c0_i32, %c0_i32_0 : i32, i32
  }
  func.func @transform_3(%arg0: i32) -> (i32, i32) {
    %c0_i32 = arith.constant 0 : i32
    %c0_i32_0 = arith.constant 0 : i32
    %c0_i32_1 = arith.constant 0 : i32
    return %c0_i32, %c0_i32_0 : i32, i32
  }
  func.func @transform_4(%arg0: i32) -> (i32, i32) {
    %c0_i32 = arith.constant 0 : i32
    %c0_i32_0 = arith.constant 0 : i32
    %c0_i32_1 = arith.constant 0 : i32
    return %c0_i32, %c0_i32_0 : i32, i32
  }
  func.func @transform_5(%arg0: i32) -> (i32, i32) {
    %c0_i32 = arith.constant 0 : i32
    %c0_i32_0 = arith.constant 0 : i32
    %c0_i32_1 = arith.constant 0 : i32
    return %c0_i32, %c0_i32_0 : i32, i32
  }
  func.func @transform_6(%arg0: i32) -> (i32, i32) {
    %c0_i32 = arith.constant 0 : i32
    %c0_i32_0 = arith.constant 0 : i32
    %c0_i32_1 = arith.constant 0 : i32
    return %c0_i32, %c0_i32_0 : i32, i32
  }
  func.func @transform_7(%arg0: i32) -> (i32, i32) {
    %c0_i32 = arith.constant 0 : i32
    %c0_i32_0 = arith.constant 0 : i32
    return %arg0, %c0_i32 : i32, i32
  }
}

</mosaic_0001>

<bundles_post_ra>
// kernel: domain_discriminator_forward_padded.1
= control target key start
LH: loop header
LB: loop body
LE: loop exit
PB: predicated region body
PF: predicated region fallthrough
CT: control target
= control target key end

     0   :  { %12 = vsyncpa [#allocation3], 0  ;;  %s1300_s0 = inlined_call_operand.hbm [shape: f32[16,256], index: 0, kind: input, shape index: {}]   ;;  %s1301_s1 = inlined_call_operand.hbm [shape: bf16[256,256], index: 1, kind: input, shape index: {}]   ;;  %s1302_s2 = inlined_call_operand.vmem [shape: f32[1,256], index: 2, kind: input, shape index: {}]   ;;  %s1303_s3 = inlined_call_operand.hbm [shape: bf16[256,256], index: 3, kind: input, shape index: {}]   ;;  %s1304_s4 = inlined_call_operand.vmem [shape: f32[1,256], index: 4, kind: input, shape index: {}]   ;;  %s1305_s5 = inlined_call_operand.hbm [shape: bf16[256,128], index: 5, kind: input, shape index: {}]   ;;  %s1306_s6 = inlined_call_operand.vmem [shape: f32[1,128], index: 6, kind: input, shape index: {}]   ;;  %s1307_s7 = inlined_call_operand.hbm [shape: f32[16,128], index: 7, kind: output, shape index: {}]  }
   0x1   :  { %13 = vsyncpa [#allocation6], 0 }
   0x2   :  { %14 = vsyncpa [#allocation9], 0 }
   0x3   :  { %15 = vsyncpa [#allocation4], 0  ;;  %s1164_s24 = smov [#allocation5]   ;;  %s1046_s28 = scalar_lea.hbm %s1301_s1, 4096 }
   0x4   :  { %s33_s25 = sshll.u32 %s1164_s24, 4  ;;  %p1047_p0 = scmp.ne.s32.totalorder %s1301_s1, %s1046_s28  ;;  %s34_s25 = int_to_ptr.vmem [resolvable:$true] %s33_s25 }
   0x5   :  { %p1050_p1 = scmp.lt.u32.totalorder %s1046_s28, %s1301_s1 }
   0x7   :  { %p1052_p2 = pnand %p1050_p1, %p1047_p0 }
   0x9   :  { %1055 = shalt.err (!%p1052_p2)
}
   0xa   :  { %s1056_s10 = scalar_lea.vmem %s34_s25, 4096  ;;  %p1061_p4 = scmp.lt.s32.totalorder %s34_s25, %s34_s25 }
   0xb   :  { %p1057_p3 = scmp.ne.s32.totalorder %s34_s25, %s1056_s10  ;;  %p1062_p5 = scmp.lt.s32.totalorder %s1056_s10, %s1056_s10 }
   0xd   :  { %p1063_p6 = por %p1062_p5, %p1061_p4 }
   0xf   :  { %p1064_p7 = pnand %p1063_p6, %p1057_p3 }
  0x11   :  { %1067 = shalt.err (!%p1064_p7)
}
  0x12   :  { %s1165_s11 = smov 128   ;;  %s1166_s12 = smov 8  }
  0x13   :  { %39 = dma.hbm_to_vmem [thread:$0]  %s1301_s1, 4096, %s34_s25, [#allocation6], %s1165_s11, %s1165_s11, %s1166_s12  }
  0x14   :  { %s1167_s15 = smov [#allocation2]   ;;  %s1068_s19 = scalar_lea.hbm %s1300_s0, 512 }
  0x15   :  { %s21_s16 = sshll.u32 %s1167_s15, 4  ;;  %p1069_p8 = scmp.ne.s32.totalorder %s1300_s0, %s1068_s19  ;;  %s22_s16 = int_to_ptr.vmem [resolvable:$true] %s21_s16 }
  0x16   :  { %p1072_p9 = scmp.lt.u32.totalorder %s1068_s19, %s1300_s0 }
  0x18   :  { %p1074_p10 = pnand %p1072_p9, %p1069_p8 }
  0x1a   :  { %1077 = shalt.err (!%p1074_p10)
}
  0x1b   :  { %s1078_s24 = scalar_lea.vmem %s22_s16, 512  ;;  %p1083_p12 = scmp.lt.s32.totalorder %s22_s16, %s22_s16 }
  0x1c   :  { %p1079_p11 = scmp.ne.s32.totalorder %s22_s16, %s1078_s24  ;;  %p1084_p13 = scmp.lt.s32.totalorder %s1078_s24, %s1078_s24 }
  0x1e   :  { %p1085_p0 = por %p1084_p13, %p1083_p12 }
  0x20   :  { %p1086_p1 = pnand %p1085_p0, %p1079_p11 }
  0x22   :  { %1089 = shalt.err (!%p1086_p1)
}
  0x23   :  { %s1168_s1 = smov 256   ;;  %s1169_s25 = smov 16  }
  0x24   :  { %27 = dma.hbm_to_vmem [thread:$0]  %s1300_s0, 512, %s22_s16, [#allocation3], %s1168_s1, %s1168_s1, %s1169_s25  }
  0x25   :  { %s1170_s28 = smov [#allocation7]   ;;  %s1171_s30 = smov [#allocation8]  }
  0x26   :  { %s47_s29 = sshll.u32 %s1170_s28, 4  ;;  %s61_s8 = sshll.u32 %s1171_s30, 4  ;;  %s48_s29 = int_to_ptr.vmem [resolvable:$true] %s47_s29  ;;  %s1242_s8 = int_to_ptr.vmem [resolvable:$true] %s61_s8 }
  0x27   :  { %s1090_s13 = scalar_lea.hbm %s1303_s3, 4096 }
  0x28   :  { %p1091_p2 = scmp.ne.s32.totalorder %s1303_s3, %s1090_s13  ;;  %p1094_p3 = scmp.lt.u32.totalorder %s1090_s13, %s1303_s3 }
  0x2a   :  { %p1096_p4 = pnand %p1094_p3, %p1091_p2 }
  0x2c   :  { %1099 = shalt.err (!%p1096_p4)
}
  0x2d   :  { %s1100_s0 = scalar_lea.vmem %s48_s29, 4096  ;;  %p1105_p6 = scmp.lt.s32.totalorder %s48_s29, %s48_s29 }
  0x2e   :  { %p1101_p5 = scmp.ne.s32.totalorder %s48_s29, %s1100_s0  ;;  %p1106_p7 = scmp.lt.s32.totalorder %s1100_s0, %s1100_s0 }
  0x30   :  { %p1107_p8 = por %p1106_p7, %p1105_p6 }
  0x32   :  { %p1108_p9 = pnand %p1107_p8, %p1101_p5 }
  0x34   :  { %1111 = shalt.err (!%p1108_p9)
}
  0x35   :  { %53 = dma.hbm_to_vmem [thread:$0]  %s1303_s3, 4096, %s48_s29, [#allocation6], %s1165_s11, %s1165_s11, %s1166_s12  }
  0x36   :  { %s1112_s22 = scalar_lea.hbm %s1305_s5, 2048 }
  0x37   :  { %p1113_p10 = scmp.ne.s32.totalorder %s1305_s5, %s1112_s22  ;;  %p1116_p11 = scmp.lt.u32.totalorder %s1112_s22, %s1305_s5 }
  0x39   :  { %p1118_p12 = pnand %p1116_p11, %p1113_p10 }
  0x3b   :  { %1121 = shalt.err (!%p1118_p12)
}
  0x3c   :  { %s1122_s26 = scalar_lea.vmem %s1242_s8, 2048  ;;  %p1127_p0 = scmp.lt.s32.totalorder %s1242_s8, %s1242_s8 }
  0x3d   :  { %p1123_p13 = scmp.ne.s32.totalorder %s1242_s8, %s1122_s26  ;;  %p1128_p1 = scmp.lt.s32.totalorder %s1122_s26, %s1122_s26 }
  0x3f   :  { %p1129_p2 = por %p1128_p1, %p1127_p0 }
  0x41   :  { %p1130_p3 = pnand %p1129_p2, %p1123_p13 }
  0x43   :  { %1133 = shalt.err (!%p1130_p3)
}
  0x44   :  { %s1172_s3 = smov 64   ;;  %s1173_s27 = smov 4  }
  0x45   :  { %67 = dma.hbm_to_vmem [thread:$0]  %s1305_s5, 2048, %s1242_s8, [#allocation9], %s1172_s3, %s1172_s3, %s1173_s27  }
  0x46   :  { %1156 = dma.done.wait [#allocation3], 512  }
  0x47   :  { %1157 = vsyncadd [#allocation3], 4294966784 }
  0x48   :  { %1158 = dma.done.wait [#allocation6], 8192  }
  0x49   :  { %1159 = vsyncadd [#allocation6], 4294959104 }
  0x4a   :  { %1160 = dma.done.wait [#allocation9], 2048  }
  0x4b   :  { %1161 = vsyncadd [#allocation9], 4294965248  ;;  %v926_v0 = vld [vmem:[#allocation5 + $0x4] ss:$8 sps:$4 sm:$0xff]   ;;  %v928_v1 = vld [vmem:[#allocation5] ss:$8 sps:$4 sm:$0xff]  }
  0x4c   :  { %293 = vmatprep.subr.bf16.mxu0 %v926_v0  ;;  %v929_v2 = vld [vmem:[#allocation5 + $0x14] ss:$8 sps:$4 sm:$0xff]   ;;  %v931_v3 = vld [vmem:[#allocation5 + $0x10] ss:$8 sps:$4 sm:$0xff]   ;;  %v932_v4 = vld [vmem:[#allocation5 + $0x24] ss:$8 sps:$4 sm:$0xff]  }
  0x4d   :  { %294 = vmatpush1.bf16.msra.mxu0 %v928_v1  ;;  %v934_v5 = vld [vmem:[#allocation5 + $0x20] ss:$8 sps:$4 sm:$0xff]   ;;  %v935_v6 = vld [vmem:[#allocation5 + $0x34] ss:$8 sps:$4 sm:$0xff]   ;;  %v937_v7 = vld [vmem:[#allocation5 + $0x30] ss:$8 sps:$4 sm:$0xff]  }
  0x4e   :  { %295 = vmatprep.subr.bf16.mxu0 %v929_v2  ;;  %v938_v8 = vld [vmem:[#allocation5 + $0x44] ss:$8 sps:$4 sm:$0xff]   ;;  %v940_v9 = vld [vmem:[#allocation5 + $0x40] ss:$8 sps:$4 sm:$0xff]   ;;  %v941_v10 = vld [vmem:[#allocation5 + $0x54] ss:$8 sps:$4 sm:$0xff]  }
  0x4f   :  { %v943_v11 = vld [vmem:[#allocation5 + $0x50] ss:$8 sps:$4 sm:$0xff]   ;;  %v944_v12 = vld [vmem:[#allocation5 + $0x64] ss:$8 sps:$4 sm:$0xff]   ;;  %v946_v15 = vld [vmem:[#allocation5 + $0x60] ss:$8 sps:$4 sm:$0xff]  }
  0x50   :  { %v84_v13 = vld [vmem:[#allocation2 + $0x8] sm:$0xff]  ;;  %v86_v14 = vld [vmem:[#allocation2 + $0x18] sm:$0xff]  ;;  %v83_v55 = vld [vmem:[#allocation2] sm:$0xff] }
  0x51   :  { %296 = vmatpush1.bf16.msra.mxu0 %v931_v3  ;;  %v947_v16 = vld [vmem:[#allocation5 + $0x74] ss:$8 sps:$4 sm:$0xff]   ;;  %v88_v17 = vpack.c.bf16 %v86_v14, %v84_v13  ;;  %v974_v18 = vld [vmem:[#allocation7 + $0x4] ss:$8 sps:$4 sm:$0xff]   ;;  %v976_v19 = vld [vmem:[#allocation7] ss:$8 sps:$4 sm:$0xff]  }
  0x52   :  { %297 = vmatprep.subr.bf16.mxu0 %v932_v4  ;;  %v977_v20 = vld [vmem:[#allocation7 + $0x14] ss:$8 sps:$4 sm:$0xff]   ;;  %546 = vmatprep.subr.bf16.mxu1 %v974_v18  ;;  %v979_v21 = vld [vmem:[#allocation7 + $0x10] ss:$8 sps:$4 sm:$0xff]   ;;  %v980_v23 = vld [vmem:[#allocation7 + $0x24] ss:$8 sps:$4 sm:$0xff]  }
  0x53   :  { %325 = vmatprep.mubr.bf16.mxu0 %v88_v17  ;;  %547 = vmatpush1.bf16.msra.mxu1 %v976_v19  ;;  %v949_v22 = vld [vmem:[#allocation5 + $0x70] ss:$8 sps:$4 sm:$0xff]   ;;  %v950_v24 = vld [vmem:[#allocation5 + $0x84] ss:$8 sps:$4 sm:$0xff]   ;;  %v982_v25 = vld [vmem:[#allocation7 + $0x20] ss:$8 sps:$4 sm:$0xff]   ;;  %v123_v17 = vlaneseq }
  0x54   :  { %548 = vmatprep.subr.bf16.mxu1 %v977_v20  ;;  %v952_v26 = vld [vmem:[#allocation5 + $0x80] ss:$8 sps:$4 sm:$0xff]   ;;  %v983_v27 = vld [vmem:[#allocation7 + $0x34] ss:$8 sps:$4 sm:$0xff]   ;;  %v985_v29 = vld [vmem:[#allocation7 + $0x30] ss:$8 sps:$4 sm:$0xff]  }
  0x55   :  { %298 = vmatpush1.bf16.msra.mxu0 %v934_v5  ;;  %v953_v28 = vld [vmem:[#allocation5 + $0x94] ss:$8 sps:$4 sm:$0xff]   ;;  %v955_v30 = vld [vmem:[#allocation5 + $0x90] ss:$8 sps:$4 sm:$0xff]   ;;  %v986_v31 = vld [vmem:[#allocation7 + $0x44] ss:$8 sps:$4 sm:$0xff]  }
  0x56   :  { %299 = vmatprep.subr.bf16.mxu0 %v935_v6  ;;  %v956_v32 = vld [vmem:[#allocation5 + $0xa4] ss:$8 sps:$4 sm:$0xff]   ;;  %v958_v33 = vld [vmem:[#allocation5 + $0xa0] ss:$8 sps:$4 sm:$0xff]   ;;  %v959_v35 = vld [vmem:[#allocation5 + $0xb4] ss:$8 sps:$4 sm:$0xff]  }
  0x57   :  { %549 = vmatpush1.bf16.msra.mxu1 %v979_v21  ;;  %v988_v34 = vld [vmem:[#allocation7 + $0x40] ss:$8 sps:$4 sm:$0xff]   ;;  %v989_v36 = vld [vmem:[#allocation7 + $0x54] ss:$8 sps:$4 sm:$0xff]   ;;  %v991_v37 = vld [vmem:[#allocation7 + $0x50] ss:$8 sps:$4 sm:$0xff]  }
  0x58   :  { %550 = vmatprep.subr.bf16.mxu1 %v980_v23  ;;  %v961_v38 = vld [vmem:[#allocation5 + $0xb0] ss:$8 sps:$4 sm:$0xff]   ;;  %v992_v39 = vld [vmem:[#allocation7 + $0x64] ss:$8 sps:$4 sm:$0xff]   ;;  %v994_v41 = vld [vmem:[#allocation7 + $0x60] ss:$8 sps:$4 sm:$0xff]  }
  0x59   :  { %300 = vmatpush1.bf16.msra.mxu0 %v937_v7  ;;  %v962_v40 = vld [vmem:[#allocation5 + $0xc4] ss:$8 sps:$4 sm:$0xff]   ;;  %v964_v42 = vld [vmem:[#allocation5 + $0xc0] ss:$8 sps:$4 sm:$0xff]   ;;  %v995_v43 = vld [vmem:[#allocation7 + $0x74] ss:$8 sps:$4 sm:$0xff]  }
  0x5a   :  { %301 = vmatprep.subr.bf16.mxu0 %v938_v8  ;;  %v965_v44 = vld [vmem:[#allocation5 + $0xd4] ss:$8 sps:$4 sm:$0xff]   ;;  %v997_v45 = vld [vmem:[#allocation7 + $0x70] ss:$8 sps:$4 sm:$0xff]   ;;  %v998_v47 = vld [vmem:[#allocation7 + $0x84] ss:$8 sps:$4 sm:$0xff]  }
  0x5b   :  { %551 = vmatpush1.bf16.msra.mxu1 %v982_v25  ;;  %v967_v46 = vld [vmem:[#allocation5 + $0xd0] ss:$8 sps:$4 sm:$0xff]   ;;  %v968_v48 = vld [vmem:[#allocation5 + $0xe4] ss:$8 sps:$4 sm:$0xff]   ;;  %v1000_v49 = vld [vmem:[#allocation7 + $0x80] ss:$8 sps:$4 sm:$0xff]  }
  0x5c   :  { %552 = vmatprep.subr.bf16.mxu1 %v983_v27  ;;  %v970_v50 = vld [vmem:[#allocation5 + $0xe0] ss:$8 sps:$4 sm:$0xff]   ;;  %v1001_v51 = vld [vmem:[#allocation7 + $0x94] ss:$8 sps:$4 sm:$0xff]   ;;  %v973_v53 = vld [vmem:[#allocation5 + $0xf0] ss:$8 sps:$4 sm:$0xff]  }
  0x5d   :  { %302 = vmatpush1.bf16.msra.mxu0 %v940_v9  ;;  %v971_v52 = vld [vmem:[#allocation5 + $0xf4] ss:$8 sps:$4 sm:$0xff]   ;;  %v1003_v54 = vld [vmem:[#allocation7 + $0x90] ss:$8 sps:$4 sm:$0xff]   ;;  %v1004_v57 = vld [vmem:[#allocation7 + $0xa4] ss:$8 sps:$4 sm:$0xff]  }
  0x5e   :  { %303 = vmatprep.subr.bf16.mxu0 %v941_v10  ;;  %v85_v56 = vld [vmem:[#allocation2 + $0x10] sm:$0xff]  ;;  %v1006_v59 = vld [vmem:[#allocation7 + $0xa0] ss:$8 sps:$4 sm:$0xff]   ;;  %v1010_v62 = vld [vmem:[#allocation7 + $0xc4] ss:$8 sps:$4 sm:$0xff]   ;;  %v124_v18 = vshrl.u32 %v123_v17, 7 }
  0x5f   :  { %553 = vmatpush1.bf16.msra.mxu1 %v985_v29  ;;  %v87_v58 = vpack.c.bf16 %v85_v56, %v83_v55  ;;  %v1007_v60 = vld [vmem:[#allocation7 + $0xb4] ss:$8 sps:$4 sm:$0xff]   ;;  %v1009_v61 = vld [vmem:[#allocation7 + $0xb0] ss:$8 sps:$4 sm:$0xff]   ;;  %v1012_v63 = vld [vmem:[#allocation7 + $0xc0] ss:$8 sps:$4 sm:$0xff]  }
  0x60   :  { %554 = vmatprep.subr.bf16.mxu1 %v986_v31  ;;  %v1013_v0 = vld [vmem:[#allocation7 + $0xd4] ss:$8 sps:$4 sm:$0xff]   ;;  %v1015_v1 = vld [vmem:[#allocation7 + $0xd0] ss:$8 sps:$4 sm:$0xff]   ;;  %v1016_v2 = vld [vmem:[#allocation7 + $0xe4] ss:$8 sps:$4 sm:$0xff]  }
  0x61   :  { %304 = vmatpush1.bf16.msra.mxu0 %v943_v11  ;;  %v1018_v3 = vld [vmem:[#allocation7 + $0xe0] ss:$8 sps:$4 sm:$0xff]   ;;  %v1019_v4 = vld [vmem:[#allocation7 + $0xf4] ss:$8 sps:$4 sm:$0xff]   ;;  %v1021_v5 = vld [vmem:[#allocation7 + $0xf0] ss:$8 sps:$4 sm:$0xff]  }
  0x62   :  { %305 = vmatprep.subr.bf16.mxu0 %v944_v12  ;;  %v1022_v6 = vld [vmem:[#allocation8 + $0x40] sm:$0xff]   ;;  %v1024_v8 = vld [vmem:[#allocation8 + $0x48] sm:$0xff]   ;;  %v1026_v10 = vld [vmem:[#allocation8 + $0x50] sm:$0xff]   ;;  %v125_v19 = vsub.s32 0, %v124_v18  ;;  %v129_v21 = vsub.s32 1, %v124_v18 }
  0x63   :  { %555 = vmatpush1.bf16.msra.mxu1 %v988_v34  ;;  %v1023_v7 = vld [vmem:[#allocation8] sm:$0xff]   ;;  %v1025_v9 = vld [vmem:[#allocation8 + $0x8] sm:$0xff]   ;;  %v1027_v11 = vld [vmem:[#allocation8 + $0x10] sm:$0xff]  }
  0x64   :  { %556 = vmatprep.subr.bf16.mxu1 %v989_v36  ;;  %v1028_v12 = vld [vmem:[#allocation8 + $0x58] sm:$0xff]   ;;  %v1030_v14 = vld [vmem:[#allocation8 + $0x60] sm:$0xff]  }
  0x65   :  { %306 = vmatpush1.bf16.msra.mxu0 %v946_v15  ;;  %v1029_v13 = vld [vmem:[#allocation8 + $0x18] sm:$0xff]   ;;  %v1031_v15 = vld [vmem:[#allocation8 + $0x20] sm:$0xff]  }
  0x66   :  { %307 = vmatprep.subr.bf16.mxu0 %v947_v16  ;;  %v1032_v16 = vld [vmem:[#allocation8 + $0x68] sm:$0xff]   ;;  %v121_v20 = vld [vmem:[%s1302_s2] sm:$0x3] }
  0x67   :  { %557 = vmatpush1.bf16.msra.mxu1 %v991_v37  ;;  %v130_v23 = vrot.slane %v121_v20, %v129_v21 }
  0x68   :  { %558 = vmatprep.subr.bf16.mxu1 %v992_v39  ;;  %v1034_v39 = vld [vmem:[#allocation8 + $0x70] sm:$0xff]  }
  0x69   :  { %308 = vmatpush1.bf16.msra.mxu0 %v949_v22  ;;  %v126_v22 = vrot.slane %v121_v20, %v125_v19 }
  0x6a   :  { %309 = vmatprep.subr.bf16.mxu0 %v950_v24 }
  0x6b   :  { %559 = vmatpush1.bf16.msra.mxu1 %v994_v41  ;;  %v1036_v41 = vld [vmem:[#allocation8 + $0x78] sm:$0xff]  }
  0x6c   :  { %560 = vmatprep.subr.bf16.mxu1 %v995_v43  ;;  %v374_v43 = vld [vmem:[%s1304_s4] sm:$0x3] }
  0x6d   :  { %310 = vmatpush1.bf16.msra.mxu0 %v952_v26 }
  0x6e   :  { %311 = vmatprep.subr.bf16.mxu0 %v953_v28 }
  0x6f   :  { %561 = vmatpush1.bf16.msra.mxu1 %v997_v45  ;;  %v383_v45 = vrot.slane %v374_v43, %v129_v21 }
  0x70   :  { %562 = vmatprep.subr.bf16.mxu1 %v998_v47 }
  0x71   :  { %312 = vmatpush1.bf16.msra.mxu0 %v955_v30 }
  0x72   :  { %313 = vmatprep.subr.bf16.mxu0 %v956_v32 }
  0x73   :  { %563 = vmatpush1.bf16.msra.mxu1 %v1000_v49 }
  0x74   :  { %564 = vmatprep.subr.bf16.mxu1 %v1001_v51 }
  0x75   :  { %314 = vmatpush1.bf16.msra.mxu0 %v958_v33 }
  0x76   :  { %315 = vmatprep.subr.bf16.mxu0 %v959_v35 }
  0x77   :  { %565 = vmatpush1.bf16.msra.mxu1 %v1003_v54 }
  0x78   :  { %566 = vmatprep.subr.bf16.mxu1 %v1004_v57 }
  0x79   :  { %316 = vmatpush1.bf16.msra.mxu0 %v961_v38  ;;  %v1033_v38 = vld [vmem:[#allocation8 + $0x28] sm:$0xff]  }
  0x7a   :  { %317 = vmatprep.subr.bf16.mxu0 %v962_v40  ;;  %v1035_v40 = vld [vmem:[#allocation8 + $0x30] sm:$0xff]  }
  0x7b   :  { %567 = vmatpush1.bf16.msra.mxu1 %v1006_v59 }
  0x7c   :  { %568 = vmatprep.subr.bf16.mxu1 %v1007_v60 }
  0x7d   :  { %318 = vmatpush1.bf16.msra.mxu0 %v964_v42  ;;  %v1037_v42 = vld [vmem:[#allocation8 + $0x38] sm:$0xff]  }
  0x7e   :  { %319 = vmatprep.subr.bf16.mxu0 %v965_v44  ;;  %v379_v44 = vrot.slane %v374_v43, %v125_v19 }
  0x7f   :  { %569 = vmatpush1.bf16.msra.mxu1 %v1009_v61 }
  0x80   :  { %570 = vmatprep.subr.bf16.mxu1 %v1010_v62  ;;  %v876_v62 = vld [vmem:[%s1306_s6] ss:$0 sm:$0xff]  ;;  %s1174_s6 = smov [#allocation10]  }
  0x81   :  { %320 = vmatpush1.bf16.msra.mxu0 %v967_v46  ;;  %s798_s10 = sshll.u32 %s1174_s6, 4  ;;  %s799_s10 = int_to_ptr.vmem [resolvable:$true] %s798_s10 }
  0x82   :  { %321 = vmatprep.subr.bf16.mxu0 %v968_v48  ;;  %s1134_s13 = scalar_lea.vmem %s799_s10, 256  ;;  %p1139_p5 = scmp.lt.s32.totalorder %s799_s10, %s799_s10 }
  0x83   :  { %571 = vmatpush1.bf16.msra.mxu1 %v1012_v63  ;;  %p1135_p4 = scmp.ne.s32.totalorder %s799_s10, %s1134_s13  ;;  %p1140_p6 = scmp.lt.s32.totalorder %s1134_s13, %s1134_s13 }
  0x84   :  { %572 = vmatprep.subr.bf16.mxu1 %v1013_v0 }
  0x85   :  { %322 = vmatpush1.bf16.msra.mxu0 %v970_v50  ;;  %p1141_p7 = por %p1140_p6, %p1139_p5 }
  0x86   :  { %323 = vmatprep.subr.bf16.mxu0 %v971_v52 }
  0x87   :  { %573 = vmatpush1.bf16.msra.mxu1 %v1015_v1  ;;  %p1142_p8 = pnand %p1141_p7, %p1135_p4 }
  0x88   :  { %574 = vmatprep.subr.bf16.mxu1 %v1016_v2 }
  0x89   :  { %324 = vmatpush1.bf16.msra.mxu0 %v973_v53 }
  0x8a   :  { %893 = vmatprep.subr.bf16.mxu0 %v1022_v6 }
  0x8b   :  { %575 = vmatpush1.bf16.msra.mxu1 %v1018_v3 }
  0x8c   :  { %326 = vmatmul.mubr.bf16.vlgmr.msra.gmra.mrb[0].mxu0 %v87_v58  ;;  %576 = vmatprep.subr.bf16.mxu1 %v1019_v4 }
  0x8d   :  { %894 = vmatpush3.bf16.msra.mxu0 %v1023_v7 }
  0x8e   :  { %895 = vmatprep.subr.bf16.mxu0 %v1024_v8 }
  0x8f   :  { %577 = vmatpush1.bf16.msra.mxu1 %v1021_v5 }
  0x91   :  { %896 = vmatpush3.bf16.msra.mxu0 %v1025_v9 }
  0x92   :  { %897 = vmatprep.subr.bf16.mxu0 %v1026_v10 }
  0x95   :  { %898 = vmatpush3.bf16.msra.mxu0 %v1027_v11 }
  0x96   :  { %899 = vmatprep.subr.bf16.mxu0 %v1028_v12 }
  0x99   :  { %900 = vmatpush3.bf16.msra.mxu0 %v1029_v13 }
  0x9a   :  { %901 = vmatprep.subr.bf16.mxu0 %v1030_v14 }
  0x9d   :  { %902 = vmatpush3.bf16.msra.mxu0 %v1031_v15 }
  0x9e   :  { %903 = vmatprep.subr.bf16.mxu0 %v1032_v16 }
  0xa1   :  { %904 = vmatpush3.bf16.msra.mxu0 %v1033_v38 }
  0xa2   :  { %905 = vmatprep.subr.bf16.mxu0 %v1034_v39 }
  0xa5   :  { %906 = vmatpush3.bf16.msra.mxu0 %v1035_v40 }
  0xa6   :  { %907 = vmatprep.subr.bf16.mxu0 %v1036_v41 }
  0xa9   :  { %908 = vmatpush3.bf16.msra.mxu0 %v1037_v42 }
 0x15f   :  { %v327_v24 = vpop.f32.mrb[0].mxu0 }
 0x160   :  { %v328_v25 = vadd.f32 %v327_v24, %v126_v22  ;;  %v329_v26 = vpop.f32.mrb[1].mxu0 }
 0x161   :  { %v330_v27 = vadd.f32 %v329_v26, %v130_v23  ;;  %v331_v28 = vpop.f32.mrb[2].mxu0 }
 0x162   :  { %v332_v29 = vadd.f32 %v331_v28, %v126_v22  ;;  %v333_v30 = vpop.f32.mrb[3].mxu0  ;;  %v336_v32 = vmax.f32 %v328_v25, 0.0 }
 0x163   :  { %v334_v31 = vadd.f32 %v333_v30, %v130_v23  ;;  %v337_v34 = vmax.f32 %v330_v27, 0.0 }
 0x164   :  { %v338_v33 = vmax.f32 %v332_v29, 0.0 }
 0x165   :  { %v339_v35 = vmax.f32 %v334_v31, 0.0 }
 0x166   :  { %v340_v36 = vpack.c.bf16 %v338_v33, %v336_v32 }
 0x167   :  { %v341_v37 = vpack.c.bf16 %v339_v35, %v337_v34 }
 0x169   :  { %578 = vmatprep.mubr.bf16.mxu1 %v341_v37 }
 0x16a   :  { %579 = vmatmul.mubr.bf16.vlgmr.msra.gmra.mrb[0].mxu1 %v340_v36 }
 0x23d   :  { %v580_v46 = vpop.f32.mrb[0].mxu1 }
 0x23e   :  { %v581_v47 = vadd.f32 %v580_v46, %v379_v44  ;;  %v582_v48 = vpop.f32.mrb[1].mxu1 }
 0x23f   :  { %v583_v49 = vadd.f32 %v582_v48, %v383_v45  ;;  %v584_v50 = vpop.f32.mrb[2].mxu1 }
 0x240   :  { %v585_v51 = vadd.f32 %v584_v50, %v379_v44  ;;  %v586_v52 = vpop.f32.mrb[3].mxu1  ;;  %v589_v54 = vmax.f32 %v581_v47, 0.0 }
 0x241   :  { %v587_v53 = vadd.f32 %v586_v52, %v383_v45  ;;  %v590_v56 = vmax.f32 %v583_v49, 0.0 }
 0x242   :  { %v591_v55 = vmax.f32 %v585_v51, 0.0 }
 0x243   :  { %v592_v57 = vmax.f32 %v587_v53, 0.0 }
 0x244   :  { %v593_v58 = vpack.c.bf16 %v591_v55, %v589_v54 }
 0x245   :  { %v594_v59 = vpack.c.bf16 %v592_v57, %v590_v56 }
 0x247   :  { %762 = vmatprep.mubr.bf16.mxu0 %v594_v59 }
 0x248   :  { %763 = vmatmul.mubr.bf16.vlgmr.msra.gmra.mrb[4].mxu0 %v593_v58 }
 0x31b   :  { %v909_v60 = vpop.f32.mrb[4].mxu0 }
 0x31c   :  { %v910_v61 = vpop.f32.mrb[5].mxu0 }
 0x31d   :  { %v911_v63 = vadd.f32 %v910_v61, %v909_v60  ;;  %v912_v0 = vpop.f32.mrb[6].mxu0 }
 0x31e   :  { %v913_v1 = vpop.f32.mrb[7].mxu0 }
 0x31f   :  { %v914_v2 = vadd.f32 %v913_v1, %v912_v0  ;;  %v765_v3 = vadd.f32 %v911_v63, %v876_v62 }
 0x321   :  { %771 = vmax.xlane.f32.xlu0 %v765_v3  ;;  %v768_v4 = vadd.f32 %v914_v2, %v876_v62 }
 0x325   :  { %773 = vmax.xlane.f32.xlu0 %v768_v4 }
 0x3ae   :  { %v772_v5 = vpop.xlane.xlu0 %771 }
 0x3af   :  { %v775_v6 = vsub.f32 %v765_v3, %v772_v5 }
 0x3b1   :  { %v777_v7 = vmul.f32 1.442695, %v775_v6 }
 0x3b2   :  { %v774_v8 = vpop.xlane.xlu0 %773 }
 0x3b3   :  { %v776_v9 = vsub.f32 %v768_v4, %v774_v8  ;;  %1038 = vpow2.f32 %v777_v7 }
 0x3b5   :  { %v779_v10 = vmul.f32 1.442695, %v776_v9 }
 0x3b7   :  { %1040 = vpow2.f32 %v779_v10 }
 0x3bd   :  { %v1039_v11 = vpop.eup %1038 }
 0x3be   :  { %781 = vadd.xlane.f32.xlu1 %v1039_v11 }
 0x3c1   :  { %v1041_v12 = vpop.eup %1040 }
 0x3c2   :  { %783 = vadd.xlane.f32.xlu1 %v1041_v12 }
 0x44b   :  { %v782_v13 = vpop.xlane.xlu1 %781 }
 0x44c   :  { %1042 = vlog2.f32 %v782_v13 }
 0x44f   :  { %v784_v14 = vpop.xlane.xlu1 %783 }
 0x450   :  { %1044 = vlog2.f32 %v784_v14 }
 0x456   :  { %v1043_v15 = vpop.eup %1042 }
 0x457   :  { %v786_v16 = vmul.f32 0.6931472, %v1043_v15 }
 0x459   :  { %v789_v17 = vsub.f32 %v775_v6, %v786_v16 }
 0x45a   :  { %v1045_v18 = vpop.eup %1044 }
 0x45b   :  { %791 = vst [vmem:[#allocation10] sm:$0xff] %v789_v17  ;;  %v788_v19 = vmul.f32 0.6931472, %v1045_v18 }
 0x45d   :  { %v790_v20 = vsub.f32 %v776_v9, %v788_v19 }
 0x45f   :  { %792 = vst [vmem:[#allocation10 + $0x8] sm:$0xff] %v790_v20 }
 0x460   :  { %1145 = shalt.err (!%p1142_p8)
}
 0x461   :  { %s1146_s17 = scalar_lea.hbm %s1307_s7, 256 }
 0x462   :  { %p1147_p9 = scmp.ne.s32.totalorder %s1307_s7, %s1146_s17  ;;  %p1150_p10 = scmp.lt.u32.totalorder %s1146_s17, %s1307_s7 }
 0x464   :  { %p1152_p11 = pnand %p1150_p10, %p1147_p9 }
 0x466   :  { %1155 = shalt.err (!%p1152_p11)
}
 0x467   :  { %804 = dma.vmem_to_hbm [thread:$0]  %s799_s10, 256, %s1307_s7, [#allocation4], %s1165_s11, %s1165_s11, %s1166_s12  }
 0x468   :  { %1162 = dma.done.wait [#allocation4], 256  }
 0x469   :  { %1163 = vsyncadd [#allocation4], 4294967040 }
 0x46a   :  { %808 = vsyncpa [#allocation3], 1 }
 0x46b   :  { %809 = vsyncpa [#allocation6], 1 }
 0x46c   :  { %810 = vsyncpa [#allocation9], 1 }
 0x46d   :  { %811 = vsyncpa [#allocation4], 1 }

</bundles_post_ra>
